<compile_context>
chip_gen: v5e
topology: v5e:2x2
jax: 0.10.0
libtpu: 0.0.40
codegen_flags: <defaults>
</compile_context>

<pallas_src>
import functools

import jax
import jax.numpy as jnp
from jax import lax
from jax.experimental import pallas as pl
from jax.experimental.pallas import tpu as pltpu

D_PAD = 128  # lane-dense padded output width


def _round_up(x, m):
    return ((x + m - 1) // m) * m


def _apply_act(h, act_fn):
    """Matches HeteroSheafLearner.sheaf_act semantics."""
    if act_fn == "relu":
        return jnp.maximum(h, 0.0)
    if act_fn == "sigmoid":
        return jax.nn.sigmoid(h)
    if act_fn == "tanh":
        return jnp.tanh(h)
    if act_fn == "elu":
        # TODO(synk): torch.nn.functional.elu has a configurable alpha; alpha=1 assumed.
        return jnp.where(h > 0.0, h, jnp.expm1(h))
    return h  # identity for anything else / None


# ----------------------------------------------------------------------------
# Kernel 1: per-type projection  Y = X @ W_pad  (output columns padded to 128)
# ----------------------------------------------------------------------------
def _proj_kernel(x_ref, w_ref, o_ref):
    o_ref[...] = jnp.dot(
        x_ref[...], w_ref[...], preferred_element_type=jnp.float32
    ).astype(o_ref.dtype)


def _project(x, w_pad, *, tile_r=256):
    """x: [R, D] f32, w_pad: [D, 128] f32 -> [R_pad, 128] f32 (extra rows zero)."""
    R, D = x.shape
    tile_r = min(tile_r, _round_up(R, 8))
    R_pad = _round_up(R, tile_r)
    if R_pad != R:
        x = jnp.pad(x, ((0, R_pad - R), (0, 0)))
    return pl.pallas_call(
        _proj_kernel,
        out_shape=jax.ShapeDtypeStruct((R_pad, D_PAD), jnp.float32),
        grid_spec=pltpu.PrefetchScalarGridSpec(
            num_scalar_prefetch=0,
            grid=(R_pad // tile_r,),
            in_specs=[
                pl.BlockSpec((tile_r, D), lambda i: (i, 0)),
                pl.BlockSpec((D, D_PAD), lambda i: (0, 0)),  # W resident across grid
            ],
            out_specs=pl.BlockSpec((tile_r, D_PAD), lambda i: (i, 0)),
        ),
        compiler_params=pltpu.CompilerParams(
            dimension_semantics=("parallel",),
            vmem_limit_bytes=32 * 1024 * 1024,
        ),
    )(x, w_pad)


# ----------------------------------------------------------------------------
# Kernel 2: fused per-incidence gather + bias + activation.
# One combined one-hot selection matrix per tile, one MXU matmul against the
# single VMEM-resident table [Yn ; Ye ; bias ; 0-pad] (valid in the M >> N+E
# regime this restructure targets).
# ----------------------------------------------------------------------------
def _incidence_kernel(nidx_ref, eidx_ref, y_ref, o_ref, *, act_fn, he_offset,
                      bias_row):
    nidx = nidx_ref[...]                       # (tile_m, 1) int32
    eidx = eidx_ref[...] + he_offset           # (tile_m, 1) int32, offset into table
    tm = nidx.shape[0]
    k_total = y_ref.shape[0]

    col = lax.broadcasted_iota(jnp.int32, (tm, k_total), 1)
    # node column OR hyperedge column OR always-on bias column.
    sel = (nidx == col) | (eidx == col) | (col == bias_row)
    oh = sel.astype(jnp.float32)

    # Single MXU matmul = gather(node) + gather(he) + bias.
    h = jnp.dot(oh, y_ref[...], preferred_element_type=jnp.float32)
    o_ref[...] = _apply_act(h, act_fn).astype(o_ref.dtype)


def _gather_table_act(node_idx, he_idx, y_table, act_fn, *, he_offset, bias_row,
                      tile_m=512):
    """node_idx/he_idx: [M] int, y_table: [K, 128] f32 -> [M_pad, 128] f32."""
    M = node_idx.shape[0]
    tile_m = min(tile_m, _round_up(M, 8))
    M_pad = _round_up(M, tile_m)

    nidx = node_idx.astype(jnp.int32).reshape(M, 1)
    eidx = he_idx.astype(jnp.int32).reshape(M, 1)
    if M_pad != M:
        # Only the tiny [M,1] int32 index arrays are ever padded (padded rows
        # gather row 0 / bias and are sliced off by the caller).
        nidx = jnp.pad(nidx, ((0, M_pad - M), (0, 0)))
        eidx = jnp.pad(eidx, ((0, M_pad - M), (0, 0)))

    k_total = y_table.shape[0]
    kernel = functools.partial(
        _incidence_kernel, act_fn=act_fn, he_offset=he_offset, bias_row=bias_row)

    return pl.pallas_call(
        kernel,
        out_shape=jax.ShapeDtypeStruct((M_pad, D_PAD), jnp.float32),
        grid_spec=pltpu.PrefetchScalarGridSpec(
            num_scalar_prefetch=0,
            grid=(M_pad // tile_m,),
            in_specs=[
                pl.BlockSpec((tile_m, 1), lambda i: (i, 0)),        # node indices
                pl.BlockSpec((tile_m, 1), lambda i: (i, 0)),        # hyperedge indices
                pl.BlockSpec((k_total, D_PAD), lambda i: (0, 0)),   # table resident
            ],
            out_specs=pl.BlockSpec((tile_m, D_PAD), lambda i: (i, 0)),  # lane-dense
        ),
        compiler_params=pltpu.CompilerParams(
            dimension_semantics=("parallel",),  # shards row tiles across v7x's 2 TCs
            vmem_limit_bytes=32 * 1024 * 1024,
        ),
    )(nidx, eidx, y_table)


# ----------------------------------------------------------------------------
# HeteroSheafLearner in JAX
# ----------------------------------------------------------------------------
class HeteroSheafLearner:
    def __init__(self, act_fn, w, b, *, tile_m=512):
        self.act_fn = act_fn
        D2, d_out = w.shape
        assert D2 % 2 == 0, "W expected as [2D, d_out]"
        D = D2 // 2
        self.d_out = d_out
        self.tile_m = tile_m
        # Split W so the concat is never built, and pad output columns to 128
        # lanes so every downstream tensor / store is lane-dense.
        # NOTE: kept f32 for a tight correctness check; casting features+weights
        # to bf16 (f32 accumulation) halves projection DMA bytes if precision
        # allows.
        self.w_node = jnp.zeros((D, D_PAD), jnp.float32).at[:, :d_out].set(
            w[:D].astype(jnp.float32))
        self.w_he = jnp.zeros((D, D_PAD), jnp.float32).at[:, :d_out].set(
            w[D:].astype(jnp.float32))
        self.b_pad = jnp.zeros((1, D_PAD), jnp.float32).at[:, :d_out].set(
            jnp.asarray(b, jnp.float32).reshape(1, d_out))

    def _fused(self, node_feats, he_feats, he_index, act_fn):
        yn = _project(node_feats.astype(jnp.float32), self.w_node)
        ye = _project(he_feats.astype(jnp.float32), self.w_he)
        n_rows = yn.shape[0]              # multiple of 8
        e_rows = ye.shape[0]              # multiple of 8
        # Combined gather table [Yn ; Ye ; bias ; 0-pad]; row count stays a
        # multiple of 8 so the MXU contraction dim is well aligned.
        bias_block = jnp.zeros((8, D_PAD), jnp.float32).at[0, :].set(self.b_pad[0])
        y_table = jnp.concatenate([yn, ye, bias_block], axis=0)

        out = _gather_table_act(
            he_index[0], he_index[1], y_table, act_fn,
            he_offset=n_rows, bias_row=n_rows + e_rows, tile_m=self.tile_m)
        M = he_index.shape[1]
        return out[:M, : self.d_out]

    def predict_sheaf(self, node_feats, he_feats, he_index, node_types, he_types):
        # TODO(synk): predict_sheaf is @abstractmethod in the reference module;
        # this concrete stand-in computes, per incidence (i, e),
        #   concat(node_feats[i], he_feats[e]) @ W + b
        # via the restructured x_i @ W_node + e_j @ W_he + b Pallas path
        # (node_types / he_types unused by the stand-in).
        return self._fused(node_feats, he_feats, he_index, act_fn=None)

    def sheaf_act(self, h_sheaf):
        return _apply_act(h_sheaf, self.act_fn)

    def forward(self, node_feats, he_feats, he_index, node_types, he_types):
        # Equivalent to sheaf_act(predict_sheaf(...)), with the activation fused
        # into the Pallas incidence kernel.
        return self._fused(node_feats, he_feats, he_index, act_fn=self.act_fn)

    __call__ = forward


# ----------------------------------------------------------------------------
# Reference (pure jnp) for correctness sanity check.
# ----------------------------------------------------------------------------
def _reference(node_feats, he_feats, he_index, w, b, act_fn):
    xi = node_feats[he_index[0]]
    ej = he_feats[he_index[1]]
    h = jnp.concatenate([xi, ej], axis=-1) @ w + b
    return _apply_act(h, act_fn)


if __name__ == "__main__":
    key = jax.random.PRNGKey(0)
    k1, k2, k3, k4, k5, k6 = jax.random.split(key, 6)

    N, E, D = 16, 8, 32      # nodes, hyperedges, feature dim
    M = 64                   # number of (node, hyperedge) incidences
    d_out = 16               # sheaf output dim per incidence

    node_feats = jax.random.normal(k1, (N, D), dtype=jnp.float32)
    he_feats = jax.random.normal(k2, (E, D), dtype=jnp.float32)
    he_index = jnp.stack(
        [
            jax.random.randint(k3, (M,), 0, N),
            jax.random.randint(k4, (M,), 0, E),
        ],
        axis=0,
    )  # [2, M]
    node_types = jnp.zeros((N,), dtype=jnp.int32)
    he_types = jnp.zeros((E,), dtype=jnp.int32)

    # Deterministic parameters for the stand-in predict_sheaf projection.
    w = jax.random.normal(k5, (2 * D, d_out), dtype=jnp.float32) * 0.1
    b = jax.random.normal(k6, (1, d_out), dtype=jnp.float32) * 0.1

    ok = True
    for act_fn in ("relu", "sigmoid", "tanh", "elu", "none"):
        learner = HeteroSheafLearner(act_fn, w, b)
        out = learner(node_feats, he_feats, he_index, node_types, he_types)
        out = jax.block_until_ready(out)
        ref = _reference(node_feats, he_feats, he_index, w, b, act_fn)
        if not jnp.allclose(out, ref, atol=1e-4, rtol=1e-4):
            ok = False

    if ok:
        print("KERNEL_OK")
</pallas_src>

<mosaic_0001>
module attributes {stable_mosaic.version = 11 : i64} {
  func.func @_proj_kernel(%arg0: i32, %arg1: memref<16x32xf32, #tpu.memory_space<vmem>>, %arg2: memref<32x128xf32, #tpu.memory_space<vmem>>, %arg3: memref<16x128xf32, #tpu.memory_space<vmem>>) attributes {dimension_semantics = [#tpu.dimension_semantics<parallel>], iteration_bounds = array<i64: 1>, scalar_prefetch = 0 : i64, scratch_operands = 0 : i64, tpu.core_type = #tpu.core_type<tc>, window_params = [{transform_indices = @transform_0, window_bounds = array<i64: 16, 32>}, {pipeline_mode = #tpu.pipeline_mode<synchronous>, transform_indices = @transform_1, window_bounds = array<i64: 32, 128>}, {transform_indices = @transform_2, window_bounds = array<i64: 16, 128>}]} {
    %c0 = arith.constant 0 : index
    %c0_0 = arith.constant 0 : index
    %0 = vector.load %arg1[%c0, %c0_0] : memref<16x32xf32, #tpu.memory_space<vmem>>, vector<16x32xf32>
    %c0_1 = arith.constant 0 : index
    %c0_2 = arith.constant 0 : index
    %1 = vector.load %arg2[%c0_1, %c0_2] : memref<32x128xf32, #tpu.memory_space<vmem>>, vector<32x128xf32>
    %cst = arith.constant dense<0.000000e+00> : vector<16x128xf32>
    %2 = tpu.matmul %0, %1, %cst {dimension_numbers = #tpu.dot_dimension_numbers<[1], [0], [0], [1], [0, 0, 1, 1], [], []>} : vector<16x32xf32>, vector<32x128xf32>, vector<16x128xf32> -> vector<16x128xf32>
    %c0_3 = arith.constant 0 : index
    %c0_4 = arith.constant 0 : index
    %3 = vector.load %arg3[%c0_3, %c0_4] : memref<16x128xf32, #tpu.memory_space<vmem>>, vector<16x128xf32>
    tpu.vector_store %arg3[%c0_3, %c0_4], %2 {strides = array<i32>} : memref<16x128xf32, #tpu.memory_space<vmem>>, vector<16x128xf32>,
    return
  }
  func.func @transform_0(%arg0: i32) -> (i32, i32) {
    %c0_i32 = arith.constant 0 : i32
    %c0_i32_0 = arith.constant 0 : i32
    return %arg0, %c0_i32 : i32, i32
  }
  func.func @transform_1(%arg0: i32) -> (i32, i32) {
    %c0_i32 = arith.constant 0 : i32
    %c0_i32_0 = arith.constant 0 : i32
    %c0_i32_1 = arith.constant 0 : i32
    return %c0_i32, %c0_i32_0 : i32, i32
  }
  func.func @transform_2(%arg0: i32) -> (i32, i32) {
    %c0_i32 = arith.constant 0 : i32
    %c0_i32_0 = arith.constant 0 : i32
    return %arg0, %c0_i32 : i32, i32
  }
}

</mosaic_0001>

<bundles_post_ra>
// kernel: tpu_custom_call.1
= control target key start
LH: loop header
LB: loop body
LE: loop exit
PB: predicated region body
PF: predicated region fallthrough
CT: control target
= control target key end

     0   :  { %7 = vsyncpa [#allocation3], 0  ;;  %s229_s0 = inlined_call_operand.hbm [shape: f32[16,32], index: 0, kind: input, shape index: {}]   ;;  %s230_s1 = inlined_call_operand.hbm [shape: f32[32,128], index: 1, kind: input, shape index: {}]   ;;  %s231_s2 = inlined_call_operand.hbm [shape: f32[16,128], index: 2, kind: output, shape index: {}]  }
   0x1   :  { %8 = vsyncpa [#allocation6], 0 }
   0x2   :  { %9 = vsyncpa [#allocation4], 0  ;;  %s14_s11 = sshll.u32 %s229_s0, 4  ;;  %s191_s12 = smov [#allocation2]   ;;  %s15_s11 = int_to_ptr.hbm [resolvable:$true] %s14_s11 }
   0x3   :  { %s16_s13 = sshll.u32 %s191_s12, 4  ;;  %s27_s16 = sshll.u32 %s230_s1, 4  ;;  %s17_s13 = int_to_ptr.vmem [resolvable:$true] %s16_s13  ;;  %s28_s16 = int_to_ptr.hbm [resolvable:$true] %s27_s16 }
   0x4   :  { %s192_s17 = smov 128   ;;  %s193_s18 = smov 8  }
   0x5   :  { %22 = dma.hbm_to_vmem [thread:$0]  %s15_s11, 256, %s17_s13, [#allocation3], %s192_s17, %s192_s17, %s193_s18  }
   0x6   :  { %s194_s19 = smov [#allocation5]  }
   0x7   :  { %s29_s20 = sshll.u32 %s194_s19, 4  ;;  %s30_s20 = int_to_ptr.vmem [resolvable:$true] %s29_s20 }
   0x8   :  { %35 = dma.hbm_to_vmem [thread:$0]  %s28_s16, 512, %s30_s20, [#allocation6], %s192_s17, %s192_s17, %s193_s18  }
   0x9   :  { %185 = dma.done.wait [#allocation3], 256  }
   0xa   :  { %186 = vsyncadd [#allocation3], 4294967040 }
   0xb   :  { %187 = dma.done.wait [#allocation6], 512  }
   0xc   :  { %188 = vsyncadd [#allocation6], 4294966784  ;;  %v49_v0 = vld [vmem:[#allocation5 + $0x18] sm:$0xff]  ;;  %v48_v1 = vld [vmem:[#allocation5 + $0x10] sm:$0xff]  ;;  %vm50_vm0 = vcmask 261120   ;;  %s195_s0 = smov [#allocation7]  }
   0xd   :  { %69 = vmatpush.msra.mxu0 %v49_v0  ;;  %104 = vmatpush.msra.mxu1 %v49_v0  ;;  %v47_v2 = vld [vmem:[#allocation5 + $0x8] sm:$0xff]  ;;  %v46_v3 = vld [vmem:[#allocation5] sm:$0xff]  ;;  %v44_v4 = vld [vmem:[#allocation2] sm:$0xff]  ;;  %s86_s1 = sshll.u32 %s195_s0, 4  ;;  %s88_s23 = sshll.u32 %s231_s2, 4  ;;  %s87_s1 = int_to_ptr.vmem [resolvable:$true] %s86_s1  ;;  %s89_s23 = int_to_ptr.hbm [resolvable:$true] %s88_s23 }
   0xe   :  { %v45_v5 = vld [vmem:[#allocation2 + $0x8] sm:$0xff] }
   0xf   :  { %70 = vmatpush.msra.mxu0 %v48_v1  ;;  %105 = vmatpush.msra.mxu1 %v48_v1 }
  0x11   :  { %71 = vmatpush.msra.mxu0 %v47_v2  ;;  %106 = vmatpush.msra.mxu1 %v47_v2 }
  0x13   :  { %72 = vmatpush.msra.mxu0 %v46_v3  ;;  %107 = vmatpush.msra.mxu1 %v46_v3 }
  0x14   :  { %102 = vmatmul.msk.f32.vlgmr.msra.gmra.mxu0 %vm50_vm0, %v44_v4  ;;  %103 = vmatmul.msk.f32.vlgmr.msra.gmra.mxu1 %vm50_vm0, %v45_v5 }
  0x91   :  { %v74_v6 = vpop.f32.mrf.mxu0  ;;  %v77_v7 = vpop.f32.mrf.mxu1 }
  0x92   :  { %80 = vst [vmem:[#allocation7] sm:$0xff] %v74_v6 }
  0x93   :  { %81 = vst [vmem:[#allocation7 + $0x8] sm:$0xff] %v77_v7 }
  0x94   :  { %94 = dma.vmem_to_hbm [thread:$0]  %s87_s1, 256, %s89_s23, [#allocation4], %s192_s17, %s192_s17, %s193_s18  }
  0x95   :  { %189 = dma.done.wait [#allocation4], 256  }
  0x96   :  { %190 = vsyncadd [#allocation4], 4294967040 }
  0x97   :  { %99 = vsyncpa [#allocation3], 1 }
  0x98   :  { %100 = vsyncpa [#allocation6], 1 }
  0x99   :  { %101 = vsyncpa [#allocation4], 1 }

</bundles_post_ra>
